<compile_context>
chip_gen: v7x
topology: tpu7x:2x2x1
jax: 0.10.0
libtpu: 0.0.40
codegen_flags: <defaults>
</compile_context>

<pallas_src>
import functools

import jax
import jax.numpy as jnp
from jax import lax
from jax.experimental import pallas as pl
from jax.experimental.pallas import tpu as pltpu


def _cdiv(a, b):
    return (a + b - 1) // b


def _exec_loss_kernel(action_ref, price_ref, trace_ref, pen_ref, *,
                      bb, steps, b_total, penalty, target_sum):
    # grid = (num_cores, steps): axis 0 is "parallel" (megacore sharding),
    # axis 1 is the in-core batch reduction ("arbitrary") with resident
    # per-core output blocks acting as accumulators.
    c = pl.program_id(0)
    i = pl.program_id(1)

    @pl.when(i == 0)
    def _():
        trace_ref[...] = jnp.zeros_like(trace_ref)
        pen_ref[...] = jnp.zeros_like(pen_ref)

    a = action_ref[...]          # (bb, T, N) native dtype
    p = price_ref[...]           # (bb, N, T) native dtype
    T = a.shape[1]

    # Global batch offset of this block (unclamped; out-of-range rows of a
    # ragged tail block are masked out below).
    base = (c * steps + i) * bb

    # trace(A @ P) per batch element on the MXU: the permutation is folded
    # into the contraction (no XLU swapaxes); accumulation is f32 regardless
    # of input dtype (bf16 stays bf16 on the MXU feed).
    s = jnp.einsum("btn,bns->bts", a, p,
                   preferred_element_type=jnp.float32)          # (bb, T, T)

    diag = (lax.broadcasted_iota(jnp.int32, (T, T), 0)
            == lax.broadcasted_iota(jnp.int32, (T, T), 1))      # (T, T)
    bvalid = (base + lax.broadcasted_iota(jnp.int32, (bb, 1, 1), 0)) < b_total
    masked = jnp.where(jnp.logical_and(bvalid, diag[None, :, :]), s, 0.0)

    # Lane-wide partial: reduce only the batch and sublane axes (VPU adds plus
    # a small sublane reduce).  The cross-lane reduction over T is hoisted to
    # the wrapper's final jnp.sum over the (num_cores, 1, T) partials.
    rc = jnp.sum(masked, axis=0)                 # (T, T)
    rc = jnp.sum(rc, axis=0, keepdims=True)      # (1, T)
    trace_ref[...] = trace_ref[...] + rc.reshape(1, 1, T)

    if penalty:
        # penalty_equal: || sum_t action[b, :, n] - target_sum ||_2 over n.
        a32 = a.astype(jnp.float32)
        colsum = jnp.sum(a32, axis=1) - jnp.float32(target_sum)   # (bb, N)
        pensq = jnp.sum(colsum * colsum, axis=1, keepdims=True)   # (bb, 1)
        pen = jnp.sqrt(pensq)                                     # (bb, 1)
        valid2 = (base + lax.broadcasted_iota(jnp.int32, (bb, 1), 0)) < b_total
        pen = jnp.where(valid2, pen, 0.0)
        pen_ref[...] = pen_ref[...] + jnp.sum(pen)


def execution_loss(action, price, *, penalty=False, target_sum=1.0):
    """Pallas equivalent of ExecutionLoss(penalty, target_sum).forward(action, price)."""
    B, T, N = action.shape
    assert price.shape == (B, N, T), (action.shape, price.shape)

    itemsize = jnp.dtype(action.dtype).itemsize

    # Batch split over (up to) 2 TensorCores; works for odd B via the ragged
    # tail mask, and a size-2 leading "parallel" axis is harmless on 1-TC chips.
    num_cores = 2 if B >= 2 else 1
    per_core = _cdiv(B, num_cores)

    # Byte-budget-driven batch-block size (no exact-divisor requirement).
    # Accounts for the double-buffered native-dtype DMA windows plus the f32
    # (bb, T, T) matmul / mask temporaries (and the f32 penalty temp).
    dma_per_b = 2 * T * N * itemsize                      # both inputs, 1 batch elem
    temp_per_b = 8 * T * T + (4 * T * N if penalty else 0) + 16 * max(T, N)
    vmem_per_b = 2 * dma_per_b + temp_per_b               # 2x: double-buffered DMA

    BLOCK_TARGET = 4 << 20        # ~4 MiB per input block (roofline-friendly)
    TOTAL_BUDGET = 40 << 20       # keep total VMEM well under v7x's 64 MiB
    bb_block = max(1, BLOCK_TARGET // (T * N * itemsize))
    bb_total = max(1, TOTAL_BUDGET // vmem_per_b)
    bb = int(max(1, min(bb_block, bb_total, per_core)))
    # TODO(synk): if a single batch element's footprint (vmem_per_b) exceeds
    # the budget, tile T as a third grid axis instead of just growing VMEM.

    steps = _cdiv(per_core, bb)
    last_block = _cdiv(B, bb) - 1

    vmem_needed = bb * vmem_per_b + (1 << 20)
    vmem_limit = int(min(max(vmem_needed + (2 << 20), 16 << 20), 64 << 20))

    def in_index_map(c, i):
        # Clamp so fully out-of-range tail blocks re-read the last valid block
        # (their contribution is zeroed in-kernel via the validity mask).
        return (jnp.minimum(c * steps + i, last_block), 0, 0)

    kernel = functools.partial(
        _exec_loss_kernel, bb=bb, steps=steps, b_total=B,
        penalty=bool(penalty), target_sum=float(target_sum))

    flops = 2 * B * T * T * N + 2 * B * T * T
    if penalty:
        flops += 2 * B * T * N + 3 * B * N
    cost = pl.CostEstimate(
        flops=flops,
        transcendentals=(B if penalty else 0),
        bytes_accessed=(action.size + price.size) * itemsize
        + num_cores * (T + 1) * 4,
    )

    trace_parts, pen_parts = pl.pallas_call(
        kernel,
        out_shape=(
            jax.ShapeDtypeStruct((num_cores, 1, T), jnp.float32),
            jax.ShapeDtypeStruct((num_cores, 1, 1), jnp.float32),
        ),
        grid_spec=pltpu.PrefetchScalarGridSpec(
            num_scalar_prefetch=0,
            grid=(num_cores, steps),
            in_specs=[
                pl.BlockSpec((bb, T, N), in_index_map),
                pl.BlockSpec((bb, N, T), in_index_map),
            ],
            out_specs=(
                pl.BlockSpec((1, 1, T), lambda c, i: (c, 0, 0)),
                pl.BlockSpec((1, 1, 1), lambda c, i: (c, 0, 0)),
            ),
        ),
        compiler_params=pltpu.CompilerParams(
            dimension_semantics=("parallel", "arbitrary"),
            vmem_limit_bytes=vmem_limit,
        ),
        cost_estimate=cost,
    )(action, price)

    # Per-core lane-wide partials -> single cross-lane reduce + mean (hoisted).
    total = jnp.sum(trace_parts) + jnp.sum(pen_parts)
    mean = total / jnp.float32(B)

    if penalty:
        # torch: mean over dim=0 of a (B,) tensor -> scalar shape ()
        return mean.reshape(())
    # torch: mean over dim=0 of a (B, 1) tensor -> shape (1,)
    return mean.reshape((1,))


def execution_loss_ref(action, price, penalty=False, target_sum=1.0):
    """Plain-JAX reference matching the PyTorch forward."""
    relevant_cost = jnp.einsum("btn,bnt->bt", action, price)
    loss = jnp.sum(relevant_cost, axis=1)  # (B,)
    if penalty:
        s = jnp.sum(action, axis=1) - target_sum  # (B, N)
        loss = loss + jnp.sqrt(jnp.sum(s * s, axis=1))
    return jnp.mean(loss)


if __name__ == "__main__":
    key = jax.random.PRNGKey(0)
    ka, kp, ka2, kp2 = jax.random.split(key, 4)

    # Small shapes consistent with the module: B batches, T time steps, N assets.
    B, T, N = 4, 16, 32
    action = jax.random.normal(ka, (B, T, N), dtype=jnp.float32)
    price = jax.random.normal(kp, (B, N, T), dtype=jnp.float32)

    # Default path (penalty=False): returns shape (1,)
    out = execution_loss(action, price)
    jax.block_until_ready(out)
    ref = execution_loss_ref(action, price)
    assert out.shape == (1,), out.shape
    assert jnp.allclose(out[0], ref, rtol=1e-5, atol=1e-5), (out, ref)

    # Penalty path (penalty=True, target_sum=1): returns scalar
    out_p = execution_loss(action, price, penalty=True, target_sum=1.0)
    jax.block_until_ready(out_p)
    ref_p = execution_loss_ref(action, price, penalty=True, target_sum=1.0)
    assert out_p.shape == (), out_p.shape
    assert jnp.allclose(out_p, ref_p, rtol=1e-5, atol=1e-5), (out_p, ref_p)

    # Odd batch (ragged tail + both-TC split) path.
    B3 = 3
    action3 = jax.random.normal(ka2, (B3, T, N), dtype=jnp.float32)
    price3 = jax.random.normal(kp2, (B3, N, T), dtype=jnp.float32)
    out3 = execution_loss(action3, price3, penalty=True, target_sum=1.0)
    jax.block_until_ready(out3)
    ref3 = execution_loss_ref(action3, price3, penalty=True, target_sum=1.0)
    assert jnp.allclose(out3, ref3, rtol=1e-5, atol=1e-5), (out3, ref3)

    # bf16 inputs are DMA'd natively and fed to the MXU with f32 accumulation.
    action_bf = action.astype(jnp.bfloat16)
    price_bf = price.astype(jnp.bfloat16)
    out_bf = execution_loss(action_bf, price_bf)
    jax.block_until_ready(out_bf)
    ref_bf = execution_loss_ref(
        action_bf.astype(jnp.float32), price_bf.astype(jnp.float32)
    )
    assert jnp.allclose(out_bf[0], ref_bf, rtol=1e-3, atol=1e-3), (out_bf, ref_bf)

    print("KERNEL_OK")
</pallas_src>

<mosaic_0001>
module attributes {stable_mosaic.version = 11 : i64} {
  func.func @_exec_loss_kernel(%arg0: i32, %arg1: i32, %arg2: memref<2x16x32xf32, #tpu.memory_space<vmem>>, %arg3: memref<2x32x16xf32, #tpu.memory_space<vmem>>, %arg4: memref<1x1x16xf32, #tpu.memory_space<vmem>>, %arg5: memref<1x1x1xf32, #tpu.memory_space<vmem>>) attributes {dimension_semantics = [#tpu.dimension_semantics<parallel>, #tpu.dimension_semantics<arbitrary>], iteration_bounds = array<i64: 2, 1>, scalar_prefetch = 0 : i64, scratch_operands = 0 : i64, tpu.core_type = #tpu.core_type<tc>, window_params = [{transform_indices = @transform_0, window_bounds = array<i64: 2, 16, 32>}, {transform_indices = @transform_1, window_bounds = array<i64: 2, 32, 16>}, {transform_indices = @transform_2, window_bounds = array<i64: 1, 1, 16>}, {transform_indices = @transform_3, window_bounds = array<i64: 1, 1, 1>}]} {
    %c0_i32 = arith.constant 0 : i32
    %0 = arith.cmpi eq, %arg1, %c0_i32 : i32
    %1 = arith.extui %0 : i1 to i32
    %c0_i32_0 = arith.constant 0 : i32
    %2 = arith.cmpi ne, %1, %c0_i32_0 : i32
    scf.if %2 {
      %cst_15 = arith.constant 0.000000e+00 : f32
      %30 = vector.broadcast %cst_15 : f32 to vector<1x1x16xf32>
      %c0_16 = arith.constant 0 : index
      %c0_17 = arith.constant 0 : index
      %c0_18 = arith.constant 0 : index
      %31 = vector.load %arg4[%c0_16, %c0_17, %c0_18] : memref<1x1x16xf32, #tpu.memory_space<vmem>>, vector<1x1x16xf32>
      tpu.vector_store %arg4[%c0_16, %c0_17, %c0_18], %30 {strides = array<i32>} : memref<1x1x16xf32, #tpu.memory_space<vmem>>, vector<1x1x16xf32>,
      %cst_19 = arith.constant 0.000000e+00 : f32
      %32 = vector.broadcast %cst_19 : f32 to vector<1x1x1xf32>
      %c0_20 = arith.constant 0 : index
      %c0_21 = arith.constant 0 : index
      %c0_22 = arith.constant 0 : index
      %33 = vector.load %arg5[%c0_20, %c0_21, %c0_22] : memref<1x1x1xf32, #tpu.memory_space<vmem>>, vector<1x1x1xf32>
      tpu.vector_store %arg5[%c0_20, %c0_21, %c0_22], %32 {strides = array<i32>} : memref<1x1x1xf32, #tpu.memory_space<vmem>>, vector<1x1x1xf32>,
    } else {
    }
    %c0 = arith.constant 0 : index
    %c0_1 = arith.constant 0 : index
    %c0_2 = arith.constant 0 : index
    %3 = vector.load %arg2[%c0, %c0_1, %c0_2] : memref<2x16x32xf32, #tpu.memory_space<vmem>>, vector<2x16x32xf32>
    %c0_3 = arith.constant 0 : index
    %c0_4 = arith.constant 0 : index
    %c0_5 = arith.constant 0 : index
    %4 = vector.load %arg3[%c0_3, %c0_4, %c0_5] : memref<2x32x16xf32, #tpu.memory_space<vmem>>, vector<2x32x16xf32>
    %c1_i32 = arith.constant 1 : i32
    %5 = arith.muli %arg0, %c1_i32 : i32
    %6 = arith.addi %5, %arg1 : i32
    %c2_i32 = arith.constant 2 : i32
    %7 = arith.muli %6, %c2_i32 : i32
    "tpu.trace_start"() <{level = 10 : i32, message = "btn,bns->bts"}> : () -> ()
    %cst = arith.constant dense<0.000000e+00> : vector<2x16x16xf32>
    %8 = tpu.matmul %3, %4, %cst {dimension_numbers = #tpu.dot_dimension_numbers<[2], [1], [1], [2], [0, 0, 0, 1, 1, 2], [0], [0]>} : vector<2x16x32xf32>, vector<2x32x16xf32>, vector<2x16x16xf32> -> vector<2x16x16xf32>
    "tpu.trace_stop"() : () -> ()
    %9 = tpu.iota {dimensions = array<i32: 0>} : vector<16x16xi32>
    %10 = tpu.iota {dimensions = array<i32: 1>} : vector<16x16xi32>
    %11 = arith.cmpi eq, %9, %10 : vector<16x16xi32>
    %12 = tpu.iota {dimensions = array<i32: 0>} : vector<2x1x1xi32>
    %13 = vector.broadcast %7 : i32 to vector<2x1x1xi32>
    %14 = arith.addi %13, %12 : vector<2x1x1xi32>
    %c4_i32 = arith.constant 4 : i32
    %15 = vector.broadcast %c4_i32 : i32 to vector<2x1x1xi32>
    %16 = arith.cmpi slt, %14, %15 : vector<2x1x1xi32>
    %17 = vector.shape_cast %11 : vector<16x16xi1> to vector<1x16x16xi1>
    %18 = vector.broadcast %16 : vector<2x1x1xi1> to vector<2x16x16xi1>
    %19 = vector.broadcast %17 : vector<1x16x16xi1> to vector<2x16x16xi1>
    %20 = arith.andi %18, %19 : vector<2x16x16xi1>
    %cst_6 = arith.constant 0.000000e+00 : f32
    %21 = vector.broadcast %cst_6 : f32 to vector<2x16x16xf32>
    %22 = arith.select %20, %8, %21 : vector<2x16x16xi1>, vector<2x16x16xf32>
    %cst_7 = arith.constant dense<0.000000e+00> : vector<16x16xf32>
    %23 = vector.multi_reduction <add>, %22, %cst_7 [0] : vector<2x16x16xf32> to vector<16x16xf32>
    %cst_8 = arith.constant dense<0.000000e+00> : vector<16xf32>
    %24 = vector.multi_reduction <add>, %23, %cst_8 [0] : vector<16x16xf32> to vector<16xf32>
    %25 = vector.shape_cast %24 : vector<16xf32> to vector<1x16xf32>
    %c0_9 = arith.constant 0 : index
    %c0_10 = arith.constant 0 : index
    %c0_11 = arith.constant 0 : index
    %26 = vector.load %arg4[%c0_9, %c0_10, %c0_11] : memref<1x1x16xf32, #tpu.memory_space<vmem>>, vector<1x1x16xf32>
    %27 = vector.shape_cast %25 : vector<1x16xf32> to vector<1x1x16xf32>
    %28 = arith.addf %26, %27 : vector<1x1x16xf32>
    %c0_12 = arith.constant 0 : index
    %c0_13 = arith.constant 0 : index
    %c0_14 = arith.constant 0 : index
    %29 = vector.load %arg4[%c0_12, %c0_13, %c0_14] : memref<1x1x16xf32, #tpu.memory_space<vmem>>, vector<1x1x16xf32>
    tpu.vector_store %arg4[%c0_12, %c0_13, %c0_14], %28 {strides = array<i32>} : memref<1x1x16xf32, #tpu.memory_space<vmem>>, vector<1x1x16xf32>,
    return
  }
  func.func @transform_0(%arg0: i32, %arg1: i32) -> (i32, i32, i32) {
    %c1_i32 = arith.constant 1 : i32
    %0 = arith.muli %arg0, %c1_i32 : i32
    %1 = arith.addi %0, %arg1 : i32
    %c1_i32_0 = arith.constant 1 : i32
    %2 = arith.minsi %1, %c1_i32_0 : i32
    %c0_i32 = arith.constant 0 : i32
    %c0_i32_1 = arith.constant 0 : i32
    %c0_i32_2 = arith.constant 0 : i32
    return %2, %c0_i32, %c0_i32_1 : i32, i32, i32
  }
  func.func @transform_1(%arg0: i32, %arg1: i32) -> (i32, i32, i32) {
    %c1_i32 = arith.constant 1 : i32
    %0 = arith.muli %arg0, %c1_i32 : i32
    %1 = arith.addi %0, %arg1 : i32
    %c1_i32_0 = arith.constant 1 : i32
    %2 = arith.minsi %1, %c1_i32_0 : i32
    %c0_i32 = arith.constant 0 : i32
    %c0_i32_1 = arith.constant 0 : i32
    %c0_i32_2 = arith.constant 0 : i32
    return %2, %c0_i32, %c0_i32_1 : i32, i32, i32
  }
  func.func @transform_2(%arg0: i32, %arg1: i32) -> (i32, i32, i32) {
    %c0_i32 = arith.constant 0 : i32
    %c0_i32_0 = arith.constant 0 : i32
    %c0_i32_1 = arith.constant 0 : i32
    return %arg0, %c0_i32, %c0_i32_0 : i32, i32, i32
  }
  func.func @transform_3(%arg0: i32, %arg1: i32) -> (i32, i32, i32) {
    %c0_i32 = arith.constant 0 : i32
    %c0_i32_0 = arith.constant 0 : i32
    %c0_i32_1 = arith.constant 0 : i32
    return %arg0, %c0_i32, %c0_i32_0 : i32, i32, i32
  }
}

</mosaic_0001>

<bundles_post_ra>
// kernel: tpu_custom_call.1
= control target key start
LH: loop header
LB: loop body
LE: loop exit
PB: predicated region body
PF: predicated region fallthrough
CT: control target
= control target key end

     0   :  { %9 = vsyncpa [#allocation3], 0  ;;  %s980_s0 = inlined_call_operand.vmem [shape: f32[4,16,32], index: 0, kind: input, shape index: {}]   ;;  %s981_s1 = inlined_call_operand.vmem [shape: f32[4,32,16], index: 1, kind: input, shape index: {}]   ;;  %s982_s2 = inlined_call_operand.hbm [shape: f32[2,1,16], index: 2, kind: output, shape index: {0}]   ;;  %s983_s3 = inlined_call_operand.vmem [shape: f32[2,1,1], index: 3, kind: output, shape index: {1}]  }
   0x1   :  { %11 = vsyncpa [#allocation3 + $0x1], 0  ;;  %s835_s12 = smov 0   ;;  %s837_s13 = smov 0  }
   0x2   :  { %s839_s14 = smov 0   ;;  %s841_s15 = smov 0  }
   0x3   :  { %s843_s16 = smov 0   ;;  %s845_s17 = smov 0  }
   0x4 LB: > { %s606_s18 = sadd.s32 4294967295, %s811_s17   ;;  %s607_s19 = sadd.s32 4294967294, %s811_s17   ;;  %s811_s17 = sphi %s845_s17, %s17_s17   ;;  %s807_s16 = sphi %s843_s16, %s990_s16   ;;  %s803_s15 = sphi %s841_s15, %s989_s15   ;;  %s799_s14 = sphi %s839_s14, %s988_s14   ;;  %s795_s13 = sphi %s837_s13, %s987_s13   ;;  %s791_s12 = sphi %s835_s12, %s986_s12  }
   0x5   : > { %s29_s20 = sadd.s32 1, %s807_s16  ;;  %s100_s21 = sadd.s32 1, %s799_s14 }
   0x6   : > { %p31_p0 = scmp.ge.s32.totalorder %s29_s20, 2  ;;  %p110_p1 = scmp.ne.s32.totalorder %s799_s14, %s795_s13 }
   0x7   : > { %p111_p2 = scmp.eq.s32.totalorder %s606_s18, 1  ;;  %p116_p3 = scmp.ne.s32.totalorder %s795_s13, %s791_s12 }
   0x8   : > { %s992_s20 = smov (%p31_p0, %s29_s20), 0  ;;  %p117_p5 = scmp.eq.s32.totalorder %s607_s19, 1 }
   0x9   : > { %p875_p4 = por %p111_p2, %p110_p1  ;;  %s97_s23 = ssub.s32 %s807_s16, %s992_s20 }
   0xa   : > { %p610_p6 = scmp.ge.s32.totalorder %s811_s17, 1  ;;  %p98_p7 = scmp.eq.s32.totalorder %s97_s23, 0 }
   0xb   : > { %p882_p8 = por %p117_p5, %p116_p3  ;;  %p193_p9 = scmp.lt.s32.totalorder %s811_s17, 3 }
   0xc   : > { %s888_s25 = scalar_select %p98_p7, %s799_s14, %s100_s21  }
   0xd   : > { %p194_p10 = pnand %p610_p6, %p193_p9 }
   0xe   : > { %p233_p11 = scmp.lt.s32.totalorder (!%p194_p10), %s803_s15, 1  ;;  %vm283_vm0 = vcmask (!%p194_p10), 261120   ;;  %s225_s9 = sand.u32 (!%p194_p10), 1, %s795_s13   ;;  %vm265_vm1 = vcmask (!%p194_p10), 122880   ;;  %v813_v16 = vmov (!%p194_p10), 0.0   ;;  %vm267_vm2 = vcmask (!%p194_p10), 0  }
   0xf   : > { %197 = sbr.rel (%p194_p10) target bundleno = 290 (0x122), region = 28  ;;  %s908_s10 = scalar_lea.vmem (!%p194_p10), [#allocation2], %s225_s9  ;;  %v446_v17 = vlaneseq (!%p194_p10)  ;;  %vm473_vm9 = vcmask (!%p194_p10), 130048  }
  0x10   : > { %266 = vst.msk [vmem:[%s908_s10] sm:$0x1] (!%p194_p10), %vm265_vm1, %v813_v16  ;;  %s617_s21 = sshll.u32 (!%p194_p10), %s803_s15, 1  ;;  %s622_s23 = sshll.u32 (!%p194_p10), %s803_s15, 4 }
  0x11   : > { %v447_v18 = vshrl.u32 (!%p194_p10), %v446_v17, 7  ;;  %v453_v19 = vstv (!%p194_p10), %s617_s21  ;;  %v450_v21 = vand.u32 (!%p194_p10), 127, %v446_v17  ;;  %s494_s30 = scalar_lea.sflag (!%p194_p10), [#allocation3], %s225_s9 }
  0x12   : > { %v454_v22 = vadd.s32 (!%p194_p10), 1, %v453_v19  ;;  %vm455_vm4 = vcmp.lt.s32.totalorder (!%p194_p10), %v453_v19, 4 }
  0x13   : > { %v448_v20 = vadd.s32 (!%p194_p10), 8, %v447_v18  ;;  %vm451_vm6 = vcmp.eq.s32.totalorder (!%p194_p10), %v447_v18, %v450_v21 }
  0x14   : > { %vm456_vm5 = vcmp.lt.s32.totalorder (!%p194_p10), %v454_v22, 4  ;;  %vm465_vm10 = vmand (!%p194_p10), %vm455_vm4, %vm451_vm6 }
  0x15   : > { %vm452_vm3 = vcmp.eq.s32.totalorder (!%p194_p10), %v448_v20, %v450_v21  ;;  %vm467_vm11 = vmand (!%p194_p10), %vm456_vm5, %vm451_vm6 }
  0x16   : > { %s892_s26 = scalar_select %p233_p11, %s803_s15, 1  ;;  %vm466_vm7 = vmand %vm455_vm4, %vm452_vm3 }
  0x17   : > { %vm468_vm8 = vmand %vm456_vm5, %vm452_vm3  ;;  %v489_v45 = vld [vmem:[%s908_s10] sm:$0x1]  ;;  %s814_s15 = smov [#allocation2]  }
  0x18   : > { %s611_s27 = sshll.u32 %s892_s26, 1  ;;  %s260_s19 = scalar_lea.vmem %s983_s3, %s892_s26 }
  0x19   : > { %p236_p12 = scmp.lt.s32.totalorder %s611_s27, 3  ;;  %268 = vst.msk [vmem:[%s260_s19] sm:$0x1] %vm267_vm2, %v813_v16  ;;  %s509_s26 = sshll.u32 %s908_s10, 4  ;;  %s931_s26 = int_to_ptr.vmem [resolvable:$true] %s509_s26 }
  0x1a   : > { %s733_s4 = scalar_lea.vmem %s931_s26, 16 }
  0x1b   : > { %s994_s27 = smov (!%p236_p12, %s611_s27), 3  ;;  %p734_p13 = scmp.ne.s32.totalorder %s931_s26, %s733_s4 }
  0x1c   : > { %s626_s28 = sshll.u32 %s994_s27, 5  ;;  %s625_s29 = sshll.u32 %s994_s27, 4 }
  0x1d   : > { %s253_s5 = scalar_lea.vmem %s981_s1, %s626_s28  ;;  %s240_s8 = scalar_lea.vmem %s980_s0, %s625_s29 }
  0x1e   : > { %v273_v0 = vld [vmem:[%s253_s5] sm:$0xff]  ;;  %v274_v1 = vld [vmem:[%s253_s5 + $0x8] sm:$0xff]  ;;  %v275_v5 = vld [vmem:[%s253_s5 + $0x10] sm:$0xff]  ;;  %s929_s29 = scalar_lea.hbm %s982_s2, %s622_s23  ;;  %p735_p0 = pnand %p734_p13, %p875_p4 }
  0x1f   : > { %v277_v2 = vld [vmem:[%s253_s5 + $0x20] sm:$0xff]  ;;  %v661_v3 = vpack.c.bf16 %v274_v1, %v273_v0  ;;  %v278_v4 = vld [vmem:[%s253_s5 + $0x28] sm:$0xff]  ;;  %v276_v6 = vld [vmem:[%s253_s5 + $0x18] sm:$0xff] }
  0x20   : > { %v669_v7 = vpack.c.bf16 %v278_v4, %v277_v2  ;;  %v665_v8 = vpack.c.bf16 %v276_v6, %v275_v5  ;;  %v279_v9 = vld [vmem:[%s253_s5 + $0x30] sm:$0xff]  ;;  %v280_v10 = vld [vmem:[%s253_s5 + $0x38] sm:$0xff]  ;;  %v269_v11 = vld [vmem:[%s240_s8] sm:$0xff]  ;;  %p736_p1 = pneg %p735_p0  ;;  %s737_s5 = sshll.u32 %s814_s15, 4  ;;  %s738_s5 = int_to_ptr.vmem [resolvable:$false] %s737_s5 }
  0x21   : > { %662 = vmatprep.subr.bf16.mxu0 %v661_v3  ;;  %v673_v12 = vpack.c.bf16 %v280_v10, %v279_v9  ;;  %647 = vmatprep.mubr.msk.f32.mxu0 %vm283_vm0, %v269_v11  ;;  %v271_v13 = vld [vmem:[%s240_s8 + $0x10] sm:$0xff]  ;;  %v270_v14 = vld [vmem:[%s240_s8 + $0x8] sm:$0xff]  ;;  %v272_v15 = vld [vmem:[%s240_s8 + $0x18] sm:$0xff]  ;;  %s739_s6 = scalar_lea.vmem %s738_s5, 32  ;;  %p740_p2 = scmp.lt.s32.totalorder %s931_s26, %s738_s5 }
  0x22   : > { %670 = vmatprep.subr.bf16.mxu1 %v669_v7  ;;  %664 = vmatpush3.bf16.msra.mxu0 %v661_v3  ;;  %p741_p3 = scmp.lt.s32.totalorder %s739_s6, %s733_s4 }
  0x23   : > { %672 = vmatpush3.bf16.msra.mxu1 %v669_v7  ;;  %666 = vmatprep.subr.bf16.mxu0 %v665_v8 }
  0x24   : > { %674 = vmatprep.subr.bf16.mxu1 %v673_v12  ;;  %658 = vmatprep.mubr.msk.f32.mxu1 %vm283_vm0, %v271_v13  ;;  %p742_p5 = por %p741_p3, %p740_p2 }
  0x26   : > { %668 = vmatpush3.bf16.msra.mxu0 %v665_v8  ;;  %p743_p6 = pnand %p742_p5, %p736_p1 }
  0x27   : > { %676 = vmatpush3.bf16.msra.mxu1 %v673_v12 }
  0x29   : > { %648 = vmatmul.mubr.msk.f32.vlgmr.msra.gmra.mrb[0].mxu0 %vm283_vm0, %v270_v14 }
  0x2a   : > { %659 = vmatmul.mubr.msk.f32.vlgmr.msra.gmra.mrb[0].mxu1 %vm283_vm0, %v272_v15 }
  0xfc   : > { %v649_v23 = vpop.f32.mrb[0].mxu0 }
  0xfd   : > { %v470_v24 = vsel %vm466_vm7, %v649_v23, 0.0  ;;  %v660_v25 = vpop.f32.mrb[0].mxu1  ;;  %v356_v26 = vpop.f32.mrb[1].mxu0 }
  0xfe   : > { %v477_v27 = vsel %vm473_vm9, %v470_v24, 0.0  ;;  %v472_v28 = vsel %vm468_vm8, %v660_v25, 0.0  ;;  %v469_v29 = vsel %vm465_vm10, %v356_v26, 0.0  ;;  %v437_v30 = vpop.f32.mrb[1].mxu1 }
  0xff   : > { %v478_v31 = vsel %vm473_vm9, %v472_v28, 0.0  ;;  %v474_v32 = vsel %vm473_vm9, %v469_v29, 0.0  ;;  %v471_v33 = vsel %vm467_vm11, %v437_v30, 0.0 }
 0x100   : > { %v479_v34 = vadd.f32 %v478_v31, %v477_v27  ;;  %v475_v35 = vsel %vm473_vm9, %v471_v33, 0.0 }
 0x101   : > { %v476_v36 = vadd.f32 %v475_v35, %v474_v32 }
 0x102   : > { %v481_v37 = vsel %vm473_vm9, %v479_v34, 0.0 }
 0x103   : > { %v480_v38 = vsel %vm473_vm9, %v476_v36, 0.0 }
 0x104   : > { %v482_v39 = vadd.f32 %v481_v37, %v480_v38 }
 0x106   : > { %v483_v40 = vrot.slane %v482_v39, 4 }
 0x108   : > { %v484_v41 = vadd.f32 %v483_v40, %v482_v39 }
 0x10a   : > { %v485_v42 = vrot.slane %v484_v41, 2 }
 0x10c   : > { %v486_v43 = vadd.f32 %v485_v42, %v484_v41 }
 0x10e   : > { %v487_v44 = vrot.slane %v486_v43, 1 }
 0x110   : > { %v488_v46 = vadd.f32 %v487_v44, %v486_v43 }
 0x112   : > { %v490_v47 = vadd.f32 %v489_v45, %v488_v46 }
 0x114   : > { %492 = vst.msk [vmem:[%s908_s10] sm:$0x1] %vm265_vm1, %v490_v47 }
 0x115   : > { %746 = shalt.err (!%p743_p6)
}
 0x116   : > { %s747_s7 = scalar_lea.hbm %s929_s29, 16  ;;  %s751_s10 = scalar_lea.hbm %s982_s2, 32 }
 0x117   : > { %p748_p7 = scmp.ne.s32.totalorder %s929_s29, %s747_s7  ;;  %p752_p11 = scmp.lt.u32.totalorder %s929_s29, %s982_s2 }
 0x118   : > { %p753_p12 = scmp.lt.u32.totalorder %s751_s10, %s747_s7  ;;  %p755_p0 = scmp.lt.u32.totalorder %s747_s7, %s929_s29 }
 0x119   : > { %p749_p9 = pnand %p748_p7, %p875_p4 }
 0x11a   : > { %p754_p13 = por %p753_p12, %p752_p11 }
 0x11b   : > { %p750_p10 = pneg %p749_p9 }
 0x11c   : > { %p756_p1 = por %p755_p0, %p754_p13 }
 0x11e   : > { %p757_p2 = pnand %p756_p1, %p750_p10 }
 0x120   : > { %760 = shalt.err (!%p757_p2)
}
 0x121   : > { %677 = dma.vmem_to_hbm [thread:$0]  (%p875_p4), %s931_s26, 16, %s929_s29, %s494_s30  }
 0x122 PF: > { %p683_p3 = scmp.ge.s32.totalorder %s811_s17, 2  ;;  %s524_s19 = sand.u32 1, %s791_s12  }
 0x123   : > { %s525_s21 = scalar_lea.sflag [#allocation3], %s524_s19 }
 0x124   : > { %p680_p5 = pnand %p683_p3, %p882_p8 }
 0x126   : > { %786 = dma.done.wait (!%p680_p5), %s525_s21, 16  }
 0x127   : > { %788 = vsyncadd (!%p680_p5), %s525_s21, 4294967280  ;;  %s17_s17 = sadd.s32 1, %s811_s17   ;;  %s986_s12 = smov %s795_s13 }
 0x128   : > { %p14_p6 = scmp.ge.s32.totalorder %s17_s17, 4   ;;  %s987_s13 = smov %s799_s14 }
 0x129   : > { %s988_s14 = smov %s888_s25  ;;  %s989_s15 = smov %s807_s16 }
 0x12a   : > { %s990_s16 = smov %s992_s20  ;;  %16 = sbr.rel (!%p14_p6) target bundleno = 4 (0x4), region = 82 }
 0x131   :  { %535 = vsyncpa [#allocation3], 1 }
 0x132   :  { %537 = vsyncpa [#allocation3 + $0x1], 1 }

</bundles_post_ra>
